<compile_context>
chip_gen: v7x
topology: tpu7x:2x2x1
jax: 0.10.0
libtpu: 0.0.40
codegen_flags: <defaults>
</compile_context>

<pallas_src>
import functools

import jax
import jax.numpy as jnp
from jax.experimental import pallas as pl
from jax.experimental.pallas import tpu as pltpu


def _round_up(a, b):
    return (a + b - 1) // b * b


def _pick_tile(np_len):
    """Largest token tile that divides the padded sequence length."""
    if np_len <= 512:
        return np_len
    for cand in (512, 256, 128):
        if np_len % cand == 0:
            return cand
    return 128  # unreachable: np_len is a multiple of 128 here


# ---------------------------------------------------------------------------
# Kernel 1: fused QKV projection.
#   x tile (Tn, C) bf16 @ W (C, 3C) bf16 (resident) -> (Tn, 3C) f32,
#   sliced per head into q / k / v stored in (B, H, Np, HD) layout (bf16).
#   The attention scale is pre-folded into the q columns of W.
# ---------------------------------------------------------------------------
def _qkv_proj_kernel(x_ref, w_ref, q_ref, k_ref, v_ref, *,
                     num_heads, head_dim, dim):
    x = x_ref[0]                                           # (Tn, C)   bf16
    w = w_ref[...]                                         # (C, 3C)   bf16
    qkv = jnp.dot(x, w, preferred_element_type=jnp.float32)  # (Tn, 3C) f32
    for h in range(num_heads):
        lo = h * head_dim
        hi = lo + head_dim
        q_ref[0, h] = qkv[:, lo:hi].astype(q_ref.dtype)
        k_ref[0, h] = qkv[:, dim + lo:dim + hi].astype(k_ref.dtype)
        v_ref[0, h] = qkv[:, 2 * dim + lo:2 * dim + hi].astype(v_ref.dtype)


# ---------------------------------------------------------------------------
# Kernel 2: flash attention.  grid = (B, H, q_tiles, kv_tiles); kv is the
# (arbitrary) reduction axis; running softmax state lives in VMEM scratch.
# ---------------------------------------------------------------------------
def _flash_attn_kernel(q_ref, k_ref, v_ref, o_ref, m_sc, l_sc, acc_sc,
                       *, seq_len, kv_tile, needs_mask):
    ki = pl.program_id(3)

    @pl.when(ki == 0)
    def _():
        m_sc[...] = jnp.full(m_sc.shape, -1e30, dtype=jnp.float32)
        l_sc[...] = jnp.zeros(l_sc.shape, dtype=jnp.float32)
        acc_sc[...] = jnp.zeros(acc_sc.shape, dtype=jnp.float32)

    q = q_ref[0, 0]                                        # (Tq, HD)  bf16
    k = k_ref[0, 0]                                        # (Tkv, HD) bf16
    # s = q @ k^T  (contract over head_dim), f32 accumulation on the MXU.
    s = jax.lax.dot_general(q, k, (((1,), (1,)), ((), ())),
                            preferred_element_type=jnp.float32)  # (Tq, Tkv)

    if needs_mask:  # only traced when N was padded
        col = ki * kv_tile + jax.lax.broadcasted_iota(jnp.int32, s.shape, 1)
        s = jnp.where(col < seq_len, s, -1e30)

    m_prev = m_sc[...]
    m_new = jnp.maximum(m_prev, jnp.max(s, axis=-1, keepdims=True))
    alpha = jnp.exp(m_prev - m_new)
    p = jnp.exp(s - m_new)                                 # (Tq, Tkv) f32
    l_sc[...] = alpha * l_sc[...] + jnp.sum(p, axis=-1, keepdims=True)
    acc_sc[...] = alpha * acc_sc[...] + jnp.dot(
        p.astype(v_ref.dtype), v_ref[0, 0],
        preferred_element_type=jnp.float32)
    m_sc[...] = m_new

    @pl.when(ki == pl.num_programs(3) - 1)
    def _():
        inv_l = pl.reciprocal(l_sc[...], approx=True)      # EUP slot
        o_ref[0, 0] = (acc_sc[...] * inv_l).astype(o_ref.dtype)


# ---------------------------------------------------------------------------
# Kernel 3: fused output projection.
#   heads are lane-concatenated to (Tn, C), then one full-K dot with the
#   VMEM-resident (C, C) weight; bias added in f32.
# ---------------------------------------------------------------------------
def _out_proj_kernel(a_ref, w_ref, b_ref, o_ref, *, num_heads):
    a = jnp.concatenate([a_ref[0, h] for h in range(num_heads)], axis=-1)
    y = jnp.dot(a, w_ref[...], preferred_element_type=jnp.float32)  # (Tn, C)
    y = y + b_ref[...]
    o_ref[0] = y.astype(o_ref.dtype)


# ---------------------------------------------------------------------------
# Wrapper
# ---------------------------------------------------------------------------
def attention_pallas(x, w_qkv, w_proj, b_proj, num_heads):
    """Forward of the PyTorch Attention module.

    x:      (B, N, C)
    w_qkv:  (C, 3C)  such that qkv = x @ w_qkv   (PyTorch weight transposed)
    w_proj: (C, C)   such that y   = h @ w_proj
    b_proj: (1, C)
    """
    B, N, C = x.shape
    H = num_heads
    HD = C // H
    scale = HD ** (-0.5)
    out_dtype = x.dtype

    # ---- tile / padding choices -------------------------------------------
    Np = _round_up(N, 128) if N >= 128 else _round_up(N, 8)
    T = _pick_tile(Np)
    nt = Np // T
    needs_mask = Np != N

    # ---- operand layout plumbing (cheap, O(weights) once per call) --------
    if needs_mask:
        x = jnp.pad(x, ((0, 0), (0, Np - N), (0, 0)))
    x_b = x.astype(jnp.bfloat16)

    # Fold the attention scale into the q columns (first C cols) of w_qkv.
    col_scale = jnp.concatenate([
        jnp.full((C,), scale, dtype=w_qkv.dtype),
        jnp.ones((2 * C,), dtype=w_qkv.dtype)])
    w_qkv_b = (w_qkv * col_scale[None, :]).astype(jnp.bfloat16)   # (C, 3C)
    w_proj_b = w_proj.astype(jnp.bfloat16)                        # (C, C)
    b_proj_f = b_proj.reshape(1, C).astype(jnp.float32)

    vmem_limit = 48 * 1024 * 1024   # fits v7x's 64 MiB with headroom

    # ---- 1) fused QKV projection (weight resident across grid) -------------
    qkv_shape = jax.ShapeDtypeStruct((B, H, Np, HD), jnp.bfloat16)
    k1_cost = pl.CostEstimate(
        flops=int(2 * B * Np * C * 3 * C),
        transcendentals=0,
        bytes_accessed=int(B * Np * C * 2 + C * 3 * C * 2
                           + 3 * B * H * Np * HD * 2))
    q, k, v = pl.pallas_call(
        functools.partial(_qkv_proj_kernel, num_heads=H, head_dim=HD, dim=C),
        out_shape=(qkv_shape, qkv_shape, qkv_shape),
        grid_spec=pltpu.PrefetchScalarGridSpec(
            num_scalar_prefetch=0,
            grid=(B, nt),
            in_specs=[
                pl.BlockSpec((1, T, C), lambda b, t: (b, t, 0)),
                pl.BlockSpec((C, 3 * C), lambda b, t: (0, 0)),
            ],
            out_specs=[
                pl.BlockSpec((1, H, T, HD), lambda b, t: (b, 0, t, 0)),
                pl.BlockSpec((1, H, T, HD), lambda b, t: (b, 0, t, 0)),
                pl.BlockSpec((1, H, T, HD), lambda b, t: (b, 0, t, 0)),
            ],
        ),
        compiler_params=pltpu.CompilerParams(
            dimension_semantics=("parallel", "parallel"),
            vmem_limit_bytes=vmem_limit),
        cost_estimate=k1_cost,
    )(x_b, w_qkv_b)

    # ---- 2) flash attention -------------------------------------------------
    Tq = Tkv = T
    nq = nk = nt
    k2_cost = pl.CostEstimate(
        flops=int(4 * B * H * Np * Np * HD),
        transcendentals=int(B * H * Np * Np),
        bytes_accessed=int((2 * nq + 1) * B * H * Np * HD * 2
                           + B * H * Np * HD * 2))
    attn_out = pl.pallas_call(
        functools.partial(_flash_attn_kernel, seq_len=N, kv_tile=Tkv,
                          needs_mask=needs_mask),
        out_shape=jax.ShapeDtypeStruct((B, H, Np, HD), jnp.bfloat16),
        grid_spec=pltpu.PrefetchScalarGridSpec(
            num_scalar_prefetch=0,
            grid=(B, H, nq, nk),
            in_specs=[
                pl.BlockSpec((1, 1, Tq, HD),
                             lambda b, h, qi, ki: (b, h, qi, 0)),
                pl.BlockSpec((1, 1, Tkv, HD),
                             lambda b, h, qi, ki: (b, h, ki, 0)),
                pl.BlockSpec((1, 1, Tkv, HD),
                             lambda b, h, qi, ki: (b, h, ki, 0)),
            ],
            out_specs=pl.BlockSpec((1, 1, Tq, HD),
                                   lambda b, h, qi, ki: (b, h, qi, 0)),
            scratch_shapes=[
                pltpu.VMEM((Tq, 1), jnp.float32),     # running max
                pltpu.VMEM((Tq, 1), jnp.float32),     # running sum
                pltpu.VMEM((Tq, HD), jnp.float32),    # output accumulator
            ],
        ),
        compiler_params=pltpu.CompilerParams(
            dimension_semantics=("parallel", "parallel", "parallel",
                                 "arbitrary"),
            vmem_limit_bytes=vmem_limit),
        cost_estimate=k2_cost,
    )(q, k, v)

    # ---- 3) fused output projection (weight resident across grid) ----------
    k3_cost = pl.CostEstimate(
        flops=int(2 * B * Np * C * C),
        transcendentals=0,
        bytes_accessed=int(B * H * Np * HD * 2 + C * C * 2 + B * Np * C * 4))
    y = pl.pallas_call(
        functools.partial(_out_proj_kernel, num_heads=H),
        out_shape=jax.ShapeDtypeStruct((B, Np, C), out_dtype),
        grid_spec=pltpu.PrefetchScalarGridSpec(
            num_scalar_prefetch=0,
            grid=(B, nt),
            in_specs=[
                pl.BlockSpec((1, H, T, HD), lambda b, t: (b, 0, t, 0)),
                pl.BlockSpec((C, C), lambda b, t: (0, 0)),
                pl.BlockSpec((1, C), lambda b, t: (0, 0)),
            ],
            out_specs=pl.BlockSpec((1, T, C), lambda b, t: (b, t, 0)),
        ),
        compiler_params=pltpu.CompilerParams(
            dimension_semantics=("parallel", "parallel"),
            vmem_limit_bytes=vmem_limit),
        cost_estimate=k3_cost,
    )(attn_out, w_proj_b, b_proj_f)

    if needs_mask:
        y = y[:, :N, :]
    return y


# ---------------------------------------------------------------------------
# Plain-JAX reference reproducing the PyTorch forward semantics (f32).
# ---------------------------------------------------------------------------
def attention_reference(x, w_qkv, w_proj, b_proj, num_heads):
    B, N, C = x.shape
    HD = C // num_heads
    scale = HD ** (-0.5)
    qkv = x @ w_qkv                                        # (B, N, 3C)
    qkv = qkv.reshape(B, N, 3, num_heads, HD)
    qkv = jnp.transpose(qkv, (2, 0, 3, 1, 4))              # (3, B, H, N, HD)
    q, k, v = qkv[0], qkv[1], qkv[2]
    attn = jnp.einsum('bhnd,bhmd->bhnm', q, k) * scale
    attn = jax.nn.softmax(attn, axis=-1)
    out = jnp.einsum('bhnm,bhmd->bhnd', attn, v)
    out = jnp.transpose(out, (0, 2, 1, 3)).reshape(B, N, C)
    return out @ w_proj + b_proj


if __name__ == "__main__":
    # --- test 1: aligned small shapes (no padding path) ---------------------
    B, N, C = 2, 16, 64
    num_heads = 8

    key = jax.random.PRNGKey(0)
    kx, kq, kp, kb = jax.random.split(key, 4)

    x = jax.random.normal(kx, (B, N, C), dtype=jnp.float32)
    w_qkv = jax.random.normal(kq, (C, 3 * C), dtype=jnp.float32) * 0.02
    w_proj = jax.random.normal(kp, (C, C), dtype=jnp.float32) * 0.02
    b_proj = jax.random.normal(kb, (1, C), dtype=jnp.float32) * 0.02

    y = attention_pallas(x, w_qkv, w_proj, b_proj, num_heads)
    y = jax.block_until_ready(y)
    y_ref = attention_reference(x, w_qkv, w_proj, b_proj, num_heads)
    assert jnp.allclose(y, y_ref, atol=2e-2, rtol=2e-2), "mismatch vs reference"

    # --- test 2: ragged N (exercises padding + key masking) -----------------
    B2, N2, C2 = 1, 13, 32
    heads2 = 4
    k2x, k2q, k2p, k2b = jax.random.split(jax.random.PRNGKey(1), 4)
    x2 = jax.random.normal(k2x, (B2, N2, C2), dtype=jnp.float32)
    w_qkv2 = jax.random.normal(k2q, (C2, 3 * C2), dtype=jnp.float32) * 0.02
    w_proj2 = jax.random.normal(k2p, (C2, C2), dtype=jnp.float32) * 0.02
    b_proj2 = jax.random.normal(k2b, (1, C2), dtype=jnp.float32) * 0.02

    y2 = attention_pallas(x2, w_qkv2, w_proj2, b_proj2, heads2)
    y2 = jax.block_until_ready(y2)
    y2_ref = attention_reference(x2, w_qkv2, w_proj2, b_proj2, heads2)
    assert jnp.allclose(y2, y2_ref, atol=2e-2, rtol=2e-2), "mismatch (ragged N)"

    print("KERNEL_OK")
</pallas_src>

<mosaic_0001>
module attributes {stable_mosaic.version = 11 : i64} {
  func.func @_qkv_proj_kernel(%arg0: i32, %arg1: i32, %arg2: memref<1x16x64xbf16, #tpu.memory_space<vmem>>, %arg3: memref<64x192xbf16, #tpu.memory_space<vmem>>, %arg4: memref<1x8x16x8xbf16, #tpu.memory_space<vmem>>, %arg5: memref<1x8x16x8xbf16, #tpu.memory_space<vmem>>, %arg6: memref<1x8x16x8xbf16, #tpu.memory_space<vmem>>) attributes {dimension_semantics = [#tpu.dimension_semantics<parallel>, #tpu.dimension_semantics<parallel>], iteration_bounds = array<i64: 2, 1>, scalar_prefetch = 0 : i64, scratch_operands = 0 : i64, tpu.core_type = #tpu.core_type<tc>, window_params = [{transform_indices = @transform_0, window_bounds = array<i64: 1, 16, 64>}, {pipeline_mode = #tpu.pipeline_mode<synchronous>, transform_indices = @transform_1, window_bounds = array<i64: 64, 192>}, {transform_indices = @transform_2, window_bounds = array<i64: 1, 8, 16, 8>}, {transform_indices = @transform_3, window_bounds = array<i64: 1, 8, 16, 8>}, {transform_indices = @transform_4, window_bounds = array<i64: 1, 8, 16, 8>}]} {
    %c0 = arith.constant 0 : index
    %c0_0 = arith.constant 0 : index
    %c0_1 = arith.constant 0 : index
    %0 = vector.load %arg2[%c0, %c0_0, %c0_1] : memref<1x16x64xbf16, #tpu.memory_space<vmem>>, vector<1x16x64xbf16>
    %1 = vector.shape_cast %0 : vector<1x16x64xbf16> to vector<16x64xbf16>
    %c0_2 = arith.constant 0 : index
    %c0_3 = arith.constant 0 : index
    %2 = vector.load %arg3[%c0_2, %c0_3] : memref<64x192xbf16, #tpu.memory_space<vmem>>, vector<64x192xbf16>
    %cst = arith.constant dense<0.000000e+00> : vector<16x192xf32>
    %3 = tpu.matmul %1, %2, %cst {dimension_numbers = #tpu.dot_dimension_numbers<[1], [0], [0], [1], [0, 0, 1, 1], [], []>} : vector<16x64xbf16>, vector<64x192xbf16>, vector<16x192xf32> -> vector<16x192xf32>
    %4 = vector.extract_strided_slice %3 {offsets = [0, 0], sizes = [16, 8], strides = [1, 1]} : vector<16x192xf32> to vector<16x8xf32>
    %5 = arith.truncf %4 : vector<16x8xf32> to vector<16x8xbf16>
    %c0_4 = arith.constant 0 : index
    %c0_5 = arith.constant 0 : index
    %c0_6 = arith.constant 0 : index
    %c0_7 = arith.constant 0 : index
    %6 = vector.load %arg4[%c0_4, %c0_5, %c0_6, %c0_7] : memref<1x8x16x8xbf16, #tpu.memory_space<vmem>>, vector<1x1x16x8xbf16>
    %7 = vector.shape_cast %6 : vector<1x1x16x8xbf16> to vector<16x8xbf16>
    %8 = vector.shape_cast %5 : vector<16x8xbf16> to vector<1x1x16x8xbf16>
    tpu.vector_store %arg4[%c0_4, %c0_5, %c0_6, %c0_7], %8 {strides = array<i32>} : memref<1x8x16x8xbf16, #tpu.memory_space<vmem>>, vector<1x1x16x8xbf16>,
    %9 = vector.extract_strided_slice %3 {offsets = [0, 64], sizes = [16, 8], strides = [1, 1]} : vector<16x192xf32> to vector<16x8xf32>
    %10 = arith.truncf %9 : vector<16x8xf32> to vector<16x8xbf16>
    %c0_8 = arith.constant 0 : index
    %c0_9 = arith.constant 0 : index
    %c0_10 = arith.constant 0 : index
    %c0_11 = arith.constant 0 : index
    %11 = vector.load %arg5[%c0_8, %c0_9, %c0_10, %c0_11] : memref<1x8x16x8xbf16, #tpu.memory_space<vmem>>, vector<1x1x16x8xbf16>
    %12 = vector.shape_cast %11 : vector<1x1x16x8xbf16> to vector<16x8xbf16>
    %13 = vector.shape_cast %10 : vector<16x8xbf16> to vector<1x1x16x8xbf16>
    tpu.vector_store %arg5[%c0_8, %c0_9, %c0_10, %c0_11], %13 {strides = array<i32>} : memref<1x8x16x8xbf16, #tpu.memory_space<vmem>>, vector<1x1x16x8xbf16>,
    %14 = vector.extract_strided_slice %3 {offsets = [0, 128], sizes = [16, 8], strides = [1, 1]} : vector<16x192xf32> to vector<16x8xf32>
    %15 = arith.truncf %14 : vector<16x8xf32> to vector<16x8xbf16>
    %c0_12 = arith.constant 0 : index
    %c0_13 = arith.constant 0 : index
    %c0_14 = arith.constant 0 : index
    %c0_15 = arith.constant 0 : index
    %16 = vector.load %arg6[%c0_12, %c0_13, %c0_14, %c0_15] : memref<1x8x16x8xbf16, #tpu.memory_space<vmem>>, vector<1x1x16x8xbf16>
    %17 = vector.shape_cast %16 : vector<1x1x16x8xbf16> to vector<16x8xbf16>
    %18 = vector.shape_cast %15 : vector<16x8xbf16> to vector<1x1x16x8xbf16>
    tpu.vector_store %arg6[%c0_12, %c0_13, %c0_14, %c0_15], %18 {strides = array<i32>} : memref<1x8x16x8xbf16, #tpu.memory_space<vmem>>, vector<1x1x16x8xbf16>,
    %19 = vector.extract_strided_slice %3 {offsets = [0, 8], sizes = [16, 8], strides = [1, 1]} : vector<16x192xf32> to vector<16x8xf32>
    %20 = arith.truncf %19 : vector<16x8xf32> to vector<16x8xbf16>
    %c0_16 = arith.constant 0 : index
    %c1 = arith.constant 1 : index
    %c0_17 = arith.constant 0 : index
    %c0_18 = arith.constant 0 : index
    %21 = vector.load %arg4[%c0_16, %c1, %c0_17, %c0_18] : memref<1x8x16x8xbf16, #tpu.memory_space<vmem>>, vector<1x1x16x8xbf16>
    %22 = vector.shape_cast %21 : vector<1x1x16x8xbf16> to vector<16x8xbf16>
    %23 = vector.shape_cast %20 : vector<16x8xbf16> to vector<1x1x16x8xbf16>
    tpu.vector_store %arg4[%c0_16, %c1, %c0_17, %c0_18], %23 {strides = array<i32>} : memref<1x8x16x8xbf16, #tpu.memory_space<vmem>>, vector<1x1x16x8xbf16>,
    %24 = vector.extract_strided_slice %3 {offsets = [0, 72], sizes = [16, 8], strides = [1, 1]} : vector<16x192xf32> to vector<16x8xf32>
    %25 = arith.truncf %24 : vector<16x8xf32> to vector<16x8xbf16>
    %c0_19 = arith.constant 0 : index
    %c1_20 = arith.constant 1 : index
    %c0_21 = arith.constant 0 : index
    %c0_22 = arith.constant 0 : index
    %26 = vector.load %arg5[%c0_19, %c1_20, %c0_21, %c0_22] : memref<1x8x16x8xbf16, #tpu.memory_space<vmem>>, vector<1x1x16x8xbf16>
    %27 = vector.shape_cast %26 : vector<1x1x16x8xbf16> to vector<16x8xbf16>
    %28 = vector.shape_cast %25 : vector<16x8xbf16> to vector<1x1x16x8xbf16>
    tpu.vector_store %arg5[%c0_19, %c1_20, %c0_21, %c0_22], %28 {strides = array<i32>} : memref<1x8x16x8xbf16, #tpu.memory_space<vmem>>, vector<1x1x16x8xbf16>,
    %29 = vector.extract_strided_slice %3 {offsets = [0, 136], sizes = [16, 8], strides = [1, 1]} : vector<16x192xf32> to vector<16x8xf32>
    %30 = arith.truncf %29 : vector<16x8xf32> to vector<16x8xbf16>
    %c0_23 = arith.constant 0 : index
    %c1_24 = arith.constant 1 : index
    %c0_25 = arith.constant 0 : index
    %c0_26 = arith.constant 0 : index
    %31 = vector.load %arg6[%c0_23, %c1_24, %c0_25, %c0_26] : memref<1x8x16x8xbf16, #tpu.memory_space<vmem>>, vector<1x1x16x8xbf16>
    %32 = vector.shape_cast %31 : vector<1x1x16x8xbf16> to vector<16x8xbf16>
    %33 = vector.shape_cast %30 : vector<16x8xbf16> to vector<1x1x16x8xbf16>
    tpu.vector_store %arg6[%c0_23, %c1_24, %c0_25, %c0_26], %33 {strides = array<i32>} : memref<1x8x16x8xbf16, #tpu.memory_space<vmem>>, vector<1x1x16x8xbf16>,
    %34 = vector.extract_strided_slice %3 {offsets = [0, 16], sizes = [16, 8], strides = [1, 1]} : vector<16x192xf32> to vector<16x8xf32>
    %35 = arith.truncf %34 : vector<16x8xf32> to vector<16x8xbf16>
    %c0_27 = arith.constant 0 : index
    %c2 = arith.constant 2 : index
    %c0_28 = arith.constant 0 : index
    %c0_29 = arith.constant 0 : index
    %36 = vector.load %arg4[%c0_27, %c2, %c0_28, %c0_29] : memref<1x8x16x8xbf16, #tpu.memory_space<vmem>>, vector<1x1x16x8xbf16>
    %37 = vector.shape_cast %36 : vector<1x1x16x8xbf16> to vector<16x8xbf16>
    %38 = vector.shape_cast %35 : vector<16x8xbf16> to vector<1x1x16x8xbf16>
    tpu.vector_store %arg4[%c0_27, %c2, %c0_28, %c0_29], %38 {strides = array<i32>} : memref<1x8x16x8xbf16, #tpu.memory_space<vmem>>, vector<1x1x16x8xbf16>,
    %39 = vector.extract_strided_slice %3 {offsets = [0, 80], sizes = [16, 8], strides = [1, 1]} : vector<16x192xf32> to vector<16x8xf32>
    %40 = arith.truncf %39 : vector<16x8xf32> to vector<16x8xbf16>
    %c0_30 = arith.constant 0 : index
    %c2_31 = arith.constant 2 : index
    %c0_32 = arith.constant 0 : index
    %c0_33 = arith.constant 0 : index
    %41 = vector.load %arg5[%c0_30, %c2_31, %c0_32, %c0_33] : memref<1x8x16x8xbf16, #tpu.memory_space<vmem>>, vector<1x1x16x8xbf16>
    %42 = vector.shape_cast %41 : vector<1x1x16x8xbf16> to vector<16x8xbf16>
    %43 = vector.shape_cast %40 : vector<16x8xbf16> to vector<1x1x16x8xbf16>
    tpu.vector_store %arg5[%c0_30, %c2_31, %c0_32, %c0_33], %43 {strides = array<i32>} : memref<1x8x16x8xbf16, #tpu.memory_space<vmem>>, vector<1x1x16x8xbf16>,
    %44 = vector.extract_strided_slice %3 {offsets = [0, 144], sizes = [16, 8], strides = [1, 1]} : vector<16x192xf32> to vector<16x8xf32>
    %45 = arith.truncf %44 : vector<16x8xf32> to vector<16x8xbf16>
    %c0_34 = arith.constant 0 : index
    %c2_35 = arith.constant 2 : index
    %c0_36 = arith.constant 0 : index
    %c0_37 = arith.constant 0 : index
    %46 = vector.load %arg6[%c0_34, %c2_35, %c0_36, %c0_37] : memref<1x8x16x8xbf16, #tpu.memory_space<vmem>>, vector<1x1x16x8xbf16>
    %47 = vector.shape_cast %46 : vector<1x1x16x8xbf16> to vector<16x8xbf16>
    %48 = vector.shape_cast %45 : vector<16x8xbf16> to vector<1x1x16x8xbf16>
    tpu.vector_store %arg6[%c0_34, %c2_35, %c0_36, %c0_37], %48 {strides = array<i32>} : memref<1x8x16x8xbf16, #tpu.memory_space<vmem>>, vector<1x1x16x8xbf16>,
    %49 = vector.extract_strided_slice %3 {offsets = [0, 24], sizes = [16, 8], strides = [1, 1]} : vector<16x192xf32> to vector<16x8xf32>
    %50 = arith.truncf %49 : vector<16x8xf32> to vector<16x8xbf16>
    %c0_38 = arith.constant 0 : index
    %c3 = arith.constant 3 : index
    %c0_39 = arith.constant 0 : index
    %c0_40 = arith.constant 0 : index
    %51 = vector.load %arg4[%c0_38, %c3, %c0_39, %c0_40] : memref<1x8x16x8xbf16, #tpu.memory_space<vmem>>, vector<1x1x16x8xbf16>
    %52 = vector.shape_cast %51 : vector<1x1x16x8xbf16> to vector<16x8xbf16>
    %53 = vector.shape_cast %50 : vector<16x8xbf16> to vector<1x1x16x8xbf16>
    tpu.vector_store %arg4[%c0_38, %c3, %c0_39, %c0_40], %53 {strides = array<i32>} : memref<1x8x16x8xbf16, #tpu.memory_space<vmem>>, vector<1x1x16x8xbf16>,
    %54 = vector.extract_strided_slice %3 {offsets = [0, 88], sizes = [16, 8], strides = [1, 1]} : vector<16x192xf32> to vector<16x8xf32>
    %55 = arith.truncf %54 : vector<16x8xf32> to vector<16x8xbf16>
    %c0_41 = arith.constant 0 : index
    %c3_42 = arith.constant 3 : index
    %c0_43 = arith.constant 0 : index
    %c0_44 = arith.constant 0 : index
    %56 = vector.load %arg5[%c0_41, %c3_42, %c0_43, %c0_44] : memref<1x8x16x8xbf16, #tpu.memory_space<vmem>>, vector<1x1x16x8xbf16>
    %57 = vector.shape_cast %56 : vector<1x1x16x8xbf16> to vector<16x8xbf16>
    %58 = vector.shape_cast %55 : vector<16x8xbf16> to vector<1x1x16x8xbf16>
    tpu.vector_store %arg5[%c0_41, %c3_42, %c0_43, %c0_44], %58 {strides = array<i32>} : memref<1x8x16x8xbf16, #tpu.memory_space<vmem>>, vector<1x1x16x8xbf16>,
    %59 = vector.extract_strided_slice %3 {offsets = [0, 152], sizes = [16, 8], strides = [1, 1]} : vector<16x192xf32> to vector<16x8xf32>
    %60 = arith.truncf %59 : vector<16x8xf32> to vector<16x8xbf16>
    %c0_45 = arith.constant 0 : index
    %c3_46 = arith.constant 3 : index
    %c0_47 = arith.constant 0 : index
    %c0_48 = arith.constant 0 : index
    %61 = vector.load %arg6[%c0_45, %c3_46, %c0_47, %c0_48] : memref<1x8x16x8xbf16, #tpu.memory_space<vmem>>, vector<1x1x16x8xbf16>
    %62 = vector.shape_cast %61 : vector<1x1x16x8xbf16> to vector<16x8xbf16>
    %63 = vector.shape_cast %60 : vector<16x8xbf16> to vector<1x1x16x8xbf16>
    tpu.vector_store %arg6[%c0_45, %c3_46, %c0_47, %c0_48], %63 {strides = array<i32>} : memref<1x8x16x8xbf16, #tpu.memory_space<vmem>>, vector<1x1x16x8xbf16>,
    %64 = vector.extract_strided_slice %3 {offsets = [0, 32], sizes = [16, 8], strides = [1, 1]} : vector<16x192xf32> to vector<16x8xf32>
    %65 = arith.truncf %64 : vector<16x8xf32> to vector<16x8xbf16>
    %c0_49 = arith.constant 0 : index
    %c4 = arith.constant 4 : index
    %c0_50 = arith.constant 0 : index
    %c0_51 = arith.constant 0 : index
    %66 = vector.load %arg4[%c0_49, %c4, %c0_50, %c0_51] : memref<1x8x16x8xbf16, #tpu.memory_space<vmem>>, vector<1x1x16x8xbf16>
    %67 = vector.shape_cast %66 : vector<1x1x16x8xbf16> to vector<16x8xbf16>
    %68 = vector.shape_cast %65 : vector<16x8xbf16> to vector<1x1x16x8xbf16>
    tpu.vector_store %arg4[%c0_49, %c4, %c0_50, %c0_51], %68 {strides = array<i32>} : memref<1x8x16x8xbf16, #tpu.memory_space<vmem>>, vector<1x1x16x8xbf16>,
    %69 = vector.extract_strided_slice %3 {offsets = [0, 96], sizes = [16, 8], strides = [1, 1]} : vector<16x192xf32> to vector<16x8xf32>
    %70 = arith.truncf %69 : vector<16x8xf32> to vector<16x8xbf16>
    %c0_52 = arith.constant 0 : index
    %c4_53 = arith.constant 4 : index
    %c0_54 = arith.constant 0 : index
    %c0_55 = arith.constant 0 : index
    %71 = vector.load %arg5[%c0_52, %c4_53, %c0_54, %c0_55] : memref<1x8x16x8xbf16, #tpu.memory_space<vmem>>, vector<1x1x16x8xbf16>
    %72 = vector.shape_cast %71 : vector<1x1x16x8xbf16> to vector<16x8xbf16>
    %73 = vector.shape_cast %70 : vector<16x8xbf16> to vector<1x1x16x8xbf16>
    tpu.vector_store %arg5[%c0_52, %c4_53, %c0_54, %c0_55], %73 {strides = array<i32>} : memref<1x8x16x8xbf16, #tpu.memory_space<vmem>>, vector<1x1x16x8xbf16>,
    %74 = vector.extract_strided_slice %3 {offsets = [0, 160], sizes = [16, 8], strides = [1, 1]} : vector<16x192xf32> to vector<16x8xf32>
    %75 = arith.truncf %74 : vector<16x8xf32> to vector<16x8xbf16>
    %c0_56 = arith.constant 0 : index
    %c4_57 = arith.constant 4 : index
    %c0_58 = arith.constant 0 : index
    %c0_59 = arith.constant 0 : index
    %76 = vector.load %arg6[%c0_56, %c4_57, %c0_58, %c0_59] : memref<1x8x16x8xbf16, #tpu.memory_space<vmem>>, vector<1x1x16x8xbf16>
    %77 = vector.shape_cast %76 : vector<1x1x16x8xbf16> to vector<16x8xbf16>
    %78 = vector.shape_cast %75 : vector<16x8xbf16> to vector<1x1x16x8xbf16>
    tpu.vector_store %arg6[%c0_56, %c4_57, %c0_58, %c0_59], %78 {strides = array<i32>} : memref<1x8x16x8xbf16, #tpu.memory_space<vmem>>, vector<1x1x16x8xbf16>,
    %79 = vector.extract_strided_slice %3 {offsets = [0, 40], sizes = [16, 8], strides = [1, 1]} : vector<16x192xf32> to vector<16x8xf32>
    %80 = arith.truncf %79 : vector<16x8xf32> to vector<16x8xbf16>
    %c0_60 = arith.constant 0 : index
    %c5 = arith.constant 5 : index
    %c0_61 = arith.constant 0 : index
    %c0_62 = arith.constant 0 : index
    %81 = vector.load %arg4[%c0_60, %c5, %c0_61, %c0_62] : memref<1x8x16x8xbf16, #tpu.memory_space<vmem>>, vector<1x1x16x8xbf16>
    %82 = vector.shape_cast %81 : vector<1x1x16x8xbf16> to vector<16x8xbf16>
    %83 = vector.shape_cast %80 : vector<16x8xbf16> to vector<1x1x16x8xbf16>
    tpu.vector_store %arg4[%c0_60, %c5, %c0_61, %c0_62], %83 {strides = array<i32>} : memref<1x8x16x8xbf16, #tpu.memory_space<vmem>>, vector<1x1x16x8xbf16>,
    %84 = vector.extract_strided_slice %3 {offsets = [0, 104], sizes = [16, 8], strides = [1, 1]} : vector<16x192xf32> to vector<16x8xf32>
    %85 = arith.truncf %84 : vector<16x8xf32> to vector<16x8xbf16>
    %c0_63 = arith.constant 0 : index
    %c5_64 = arith.constant 5 : index
    %c0_65 = arith.constant 0 : index
    %c0_66 = arith.constant 0 : index
    %86 = vector.load %arg5[%c0_63, %c5_64, %c0_65, %c0_66] : memref<1x8x16x8xbf16, #tpu.memory_space<vmem>>, vector<1x1x16x8xbf16>
    %87 = vector.shape_cast %86 : vector<1x1x16x8xbf16> to vector<16x8xbf16>
    %88 = vector.shape_cast %85 : vector<16x8xbf16> to vector<1x1x16x8xbf16>
    tpu.vector_store %arg5[%c0_63, %c5_64, %c0_65, %c0_66], %88 {strides = array<i32>} : memref<1x8x16x8xbf16, #tpu.memory_space<vmem>>, vector<1x1x16x8xbf16>,
    %89 = vector.extract_strided_slice %3 {offsets = [0, 168], sizes = [16, 8], strides = [1, 1]} : vector<16x192xf32> to vector<16x8xf32>
    %90 = arith.truncf %89 : vector<16x8xf32> to vector<16x8xbf16>
    %c0_67 = arith.constant 0 : index
    %c5_68 = arith.constant 5 : index
    %c0_69 = arith.constant 0 : index
    %c0_70 = arith.constant 0 : index
    %91 = vector.load %arg6[%c0_67, %c5_68, %c0_69, %c0_70] : memref<1x8x16x8xbf16, #tpu.memory_space<vmem>>, vector<1x1x16x8xbf16>
    %92 = vector.shape_cast %91 : vector<1x1x16x8xbf16> to vector<16x8xbf16>
    %93 = vector.shape_cast %90 : vector<16x8xbf16> to vector<1x1x16x8xbf16>
    tpu.vector_store %arg6[%c0_67, %c5_68, %c0_69, %c0_70], %93 {strides = array<i32>} : memref<1x8x16x8xbf16, #tpu.memory_space<vmem>>, vector<1x1x16x8xbf16>,
    %94 = vector.extract_strided_slice %3 {offsets = [0, 48], sizes = [16, 8], strides = [1, 1]} : vector<16x192xf32> to vector<16x8xf32>
    %95 = arith.truncf %94 : vector<16x8xf32> to vector<16x8xbf16>
    %c0_71 = arith.constant 0 : index
    %c6 = arith.constant 6 : index
    %c0_72 = arith.constant 0 : index
    %c0_73 = arith.constant 0 : index
    %96 = vector.load %arg4[%c0_71, %c6, %c0_72, %c0_73] : memref<1x8x16x8xbf16, #tpu.memory_space<vmem>>, vector<1x1x16x8xbf16>
    %97 = vector.shape_cast %96 : vector<1x1x16x8xbf16> to vector<16x8xbf16>
    %98 = vector.shape_cast %95 : vector<16x8xbf16> to vector<1x1x16x8xbf16>
    tpu.vector_store %arg4[%c0_71, %c6, %c0_72, %c0_73], %98 {strides = array<i32>} : memref<1x8x16x8xbf16, #tpu.memory_space<vmem>>, vector<1x1x16x8xbf16>,
    %99 = vector.extract_strided_slice %3 {offsets = [0, 112], sizes = [16, 8], strides = [1, 1]} : vector<16x192xf32> to vector<16x8xf32>
    %100 = arith.truncf %99 : vector<16x8xf32> to vector<16x8xbf16>
    %c0_74 = arith.constant 0 : index
    %c6_75 = arith.constant 6 : index
    %c0_76 = arith.constant 0 : index
    %c0_77 = arith.constant 0 : index
    %101 = vector.load %arg5[%c0_74, %c6_75, %c0_76, %c0_77] : memref<1x8x16x8xbf16, #tpu.memory_space<vmem>>, vector<1x1x16x8xbf16>
    %102 = vector.shape_cast %101 : vector<1x1x16x8xbf16> to vector<16x8xbf16>
    %103 = vector.shape_cast %100 : vector<16x8xbf16> to vector<1x1x16x8xbf16>
    tpu.vector_store %arg5[%c0_74, %c6_75, %c0_76, %c0_77], %103 {strides = array<i32>} : memref<1x8x16x8xbf16, #tpu.memory_space<vmem>>, vector<1x1x16x8xbf16>,
    %104 = vector.extract_strided_slice %3 {offsets = [0, 176], sizes = [16, 8], strides = [1, 1]} : vector<16x192xf32> to vector<16x8xf32>
    %105 = arith.truncf %104 : vector<16x8xf32> to vector<16x8xbf16>
    %c0_78 = arith.constant 0 : index
    %c6_79 = arith.constant 6 : index
    %c0_80 = arith.constant 0 : index
    %c0_81 = arith.constant 0 : index
    %106 = vector.load %arg6[%c0_78, %c6_79, %c0_80, %c0_81] : memref<1x8x16x8xbf16, #tpu.memory_space<vmem>>, vector<1x1x16x8xbf16>
    %107 = vector.shape_cast %106 : vector<1x1x16x8xbf16> to vector<16x8xbf16>
    %108 = vector.shape_cast %105 : vector<16x8xbf16> to vector<1x1x16x8xbf16>
    tpu.vector_store %arg6[%c0_78, %c6_79, %c0_80, %c0_81], %108 {strides = array<i32>} : memref<1x8x16x8xbf16, #tpu.memory_space<vmem>>, vector<1x1x16x8xbf16>,
    %109 = vector.extract_strided_slice %3 {offsets = [0, 56], sizes = [16, 8], strides = [1, 1]} : vector<16x192xf32> to vector<16x8xf32>
    %110 = arith.truncf %109 : vector<16x8xf32> to vector<16x8xbf16>
    %c0_82 = arith.constant 0 : index
    %c7 = arith.constant 7 : index
    %c0_83 = arith.constant 0 : index
    %c0_84 = arith.constant 0 : index
    %111 = vector.load %arg4[%c0_82, %c7, %c0_83, %c0_84] : memref<1x8x16x8xbf16, #tpu.memory_space<vmem>>, vector<1x1x16x8xbf16>
    %112 = vector.shape_cast %111 : vector<1x1x16x8xbf16> to vector<16x8xbf16>
    %113 = vector.shape_cast %110 : vector<16x8xbf16> to vector<1x1x16x8xbf16>
    tpu.vector_store %arg4[%c0_82, %c7, %c0_83, %c0_84], %113 {strides = array<i32>} : memref<1x8x16x8xbf16, #tpu.memory_space<vmem>>, vector<1x1x16x8xbf16>,
    %114 = vector.extract_strided_slice %3 {offsets = [0, 120], sizes = [16, 8], strides = [1, 1]} : vector<16x192xf32> to vector<16x8xf32>
    %115 = arith.truncf %114 : vector<16x8xf32> to vector<16x8xbf16>
    %c0_85 = arith.constant 0 : index
    %c7_86 = arith.constant 7 : index
    %c0_87 = arith.constant 0 : index
    %c0_88 = arith.constant 0 : index
    %116 = vector.load %arg5[%c0_85, %c7_86, %c0_87, %c0_88] : memref<1x8x16x8xbf16, #tpu.memory_space<vmem>>, vector<1x1x16x8xbf16>
    %117 = vector.shape_cast %116 : vector<1x1x16x8xbf16> to vector<16x8xbf16>
    %118 = vector.shape_cast %115 : vector<16x8xbf16> to vector<1x1x16x8xbf16>
    tpu.vector_store %arg5[%c0_85, %c7_86, %c0_87, %c0_88], %118 {strides = array<i32>} : memref<1x8x16x8xbf16, #tpu.memory_space<vmem>>, vector<1x1x16x8xbf16>,
    %119 = vector.extract_strided_slice %3 {offsets = [0, 184], sizes = [16, 8], strides = [1, 1]} : vector<16x192xf32> to vector<16x8xf32>
    %120 = arith.truncf %119 : vector<16x8xf32> to vector<16x8xbf16>
    %c0_89 = arith.constant 0 : index
    %c7_90 = arith.constant 7 : index
    %c0_91 = arith.constant 0 : index
    %c0_92 = arith.constant 0 : index
    %121 = vector.load %arg6[%c0_89, %c7_90, %c0_91, %c0_92] : memref<1x8x16x8xbf16, #tpu.memory_space<vmem>>, vector<1x1x16x8xbf16>
    %122 = vector.shape_cast %121 : vector<1x1x16x8xbf16> to vector<16x8xbf16>
    %123 = vector.shape_cast %120 : vector<16x8xbf16> to vector<1x1x16x8xbf16>
    tpu.vector_store %arg6[%c0_89, %c7_90, %c0_91, %c0_92], %123 {strides = array<i32>} : memref<1x8x16x8xbf16, #tpu.memory_space<vmem>>, vector<1x1x16x8xbf16>,
    return
  }
  func.func @transform_0(%arg0: i32, %arg1: i32) -> (i32, i32, i32) {
    %c0_i32 = arith.constant 0 : i32
    %c0_i32_0 = arith.constant 0 : i32
    return %arg0, %arg1, %c0_i32 : i32, i32, i32
  }
  func.func @transform_1(%arg0: i32, %arg1: i32) -> (i32, i32) {
    %c0_i32 = arith.constant 0 : i32
    %c0_i32_0 = arith.constant 0 : i32
    %c0_i32_1 = arith.constant 0 : i32
    return %c0_i32, %c0_i32_0 : i32, i32
  }
  func.func @transform_2(%arg0: i32, %arg1: i32) -> (i32, i32, i32, i32) {
    %c0_i32 = arith.constant 0 : i32
    %c0_i32_0 = arith.constant 0 : i32
    %c0_i32_1 = arith.constant 0 : i32
    return %arg0, %c0_i32, %arg1, %c0_i32_0 : i32, i32, i32, i32
  }
  func.func @transform_3(%arg0: i32, %arg1: i32) -> (i32, i32, i32, i32) {
    %c0_i32 = arith.constant 0 : i32
    %c0_i32_0 = arith.constant 0 : i32
    %c0_i32_1 = arith.constant 0 : i32
    return %arg0, %c0_i32, %arg1, %c0_i32_0 : i32, i32, i32, i32
  }
  func.func @transform_4(%arg0: i32, %arg1: i32) -> (i32, i32, i32, i32) {
    %c0_i32 = arith.constant 0 : i32
    %c0_i32_0 = arith.constant 0 : i32
    %c0_i32_1 = arith.constant 0 : i32
    return %arg0, %c0_i32, %arg1, %c0_i32_0 : i32, i32, i32, i32
  }
}

</mosaic_0001>

<bundles_post_ra>
// kernel: tpu_custom_call.1
= control target key start
LH: loop header
LB: loop body
LE: loop exit
PB: predicated region body
PF: predicated region fallthrough
CT: control target
= control target key end

     0   :  { %10 = vsyncpa [#allocation3], 0  ;;  %s1476_s0 = inlined_call_operand.hbm [shape: bf16[2,16,64], index: 0, kind: input, shape index: {}]   ;;  %s1477_s1 = inlined_call_operand.hbm [shape: bf16[64,192], index: 1, kind: input, shape index: {}]   ;;  %s1478_s2 = inlined_call_operand.vmem [shape: bf16[2,8,16,8], index: 2, kind: output, shape index: {0}]   ;;  %s1479_s3 = inlined_call_operand.vmem [shape: bf16[2,8,16,8], index: 3, kind: output, shape index: {1}]   ;;  %s1480_s4 = inlined_call_operand.vmem [shape: bf16[2,8,16,8], index: 4, kind: output, shape index: {2}]  }
   0x1   :  { %12 = vsyncpa [#allocation3 + $0x1], 0 }
   0x2   :  { %13 = vsyncpa [#allocation5], 0  ;;  %s1177_s15 = smov 0   ;;  %s1179_s16 = smov 0  }
   0x3   :  { %s1181_s17 = smov 0   ;;  %s1183_s18 = smov 0  }
   0x4   :  { %s1185_s19 = smov 0   ;;  %s1187_s20 = smov 0  }
   0x5 LB: > { %s834_s21 = sadd.s32 4294967295, %s1128_s20   ;;  %p53_p0 = scmp.ne.s32.totalorder %s1112_s16, %s1108_s15  ;;  %s1128_s20 = sphi %s1187_s20, %s19_s20   ;;  %s1124_s19 = sphi %s1185_s19, %s1497_s19   ;;  %s1120_s18 = sphi %s1183_s18, %s1496_s18   ;;  %s1116_s17 = sphi %s1181_s17, %s1495_s17   ;;  %s1112_s16 = sphi %s1179_s16, %s1494_s16   ;;  %s1108_s15 = sphi %s1177_s15, %s1493_s15  }
   0x6   : > { %p1207_p1 = scmp.eq.s32.totalorder %s834_s21, 0  ;;  %p836_p2 = scmp.ge.s32.totalorder %s1128_s20, 1 }
   0x7   : > { %p169_p3 = scmp.lt.s32.totalorder %s1128_s20, 3  ;;  %s1130_s25 = smov [#allocation4]  }
   0x8   : > { %s1485_s22 = scalar_select %p1207_p1, 1, 0 }
   0x9   : > { %p1215_p4 = por %p1207_p1, %p53_p0  ;;  %p1219_p5 = pnand %p836_p2, %p169_p3 }
   0xa   : > { %s181_s26 = sshll.u32 %s1130_s25, 4  ;;  %s31_s28 = sadd.s32 1, %s1124_s19  ;;  %s182_s26 = int_to_ptr.vmem [resolvable:$true] %s181_s26 }
   0xb   : > { %s1486_s23 = scalar_select %p1215_p4, 1, 0 }
   0xc   : > { %s1487_s24 = scalar_select %p1219_p5, 1, 0 }
   0xd   : > { %p923_p6 = pneg %p1219_p5  ;;  %s1016_s5 = scalar_lea.hbm %s1477_s1, 1024 }
   0xe   : > { %p1017_p8 = scmp.ne.s32.totalorder %s1477_s1, %s1016_s5  ;;  %p1023_p12 = scmp.lt.u32.totalorder %s1016_s5, %s1477_s1 }
   0xf   : > { %p1227_p7 = pnand %p923_p6, %p1207_p1 }
  0x11   : > { %p1018_p9 = pneg %p1227_p7 }
  0x13   : > { %p1019_p10 = pnand %p1018_p9, %p1017_p8 }
  0x15   : > { %p1020_p11 = pneg %p1019_p10 }
  0x17   : > { %p1025_p13 = pnand %p1023_p12, %p1020_p11 }
  0x19   : > { %1028 = shalt.err (!%p1025_p13)
}
  0x1a   : > { %s1029_s10 = scalar_lea.vmem %s182_s26, 1024  ;;  %p1037_p6 = scmp.lt.s32.totalorder %s182_s26, %s182_s26 }
  0x1b   : > { %p1030_p0 = scmp.ne.s32.totalorder %s182_s26, %s1029_s10  ;;  %p1038_p1 = scmp.lt.s32.totalorder %s1029_s10, %s1029_s10 }
  0x1d   : > { %p1032_p2 = pnand %p1030_p0, %p1018_p9  ;;  %p1039_p4 = por %p1038_p1, %p1037_p6 }
  0x1f   : > { %p1033_p3 = pneg %p1032_p2 }
  0x21   : > { %p1040_p5 = pnand %p1039_p4, %p1033_p3 }
  0x23   : > { %1043 = shalt.err (!%p1040_p5)
}
  0x24   : > { %s1131_s11 = smov 128   ;;  %s1132_s12 = smov 8  }
  0x25   : > { %926 = dma.hbm_to_vmem [thread:$0]  (!%p1227_p7), %s1477_s1, 1024, %s182_s26, [#allocation5], %s1131_s11, %s1131_s11, %s1132_s12  }
  0x26   : > { %p33_p1 = scmp.ge.s32.totalorder %s31_s28, 2  ;;  %s40_s15 = sadd.s32 1, %s1116_s17 }
  0x27   : > { %p47_p4 = scmp.ne.s32.totalorder %s1116_s17, %s1112_s16  ;;  %p48_p5 = scmp.eq.s32.totalorder %s1128_s20, 0 }
  0x28   : > { %s1499_s28 = smov (%p33_p1, %s31_s28), 0  ;;  %p932_p9 = scmp.lt.s32.totalorder %s1128_s20, 2 }
  0x29   : > { %p49_p8 = por %p48_p5, %p47_p4  ;;  %s35_s21 = ssub.s32 %s1124_s19, %s1499_s28 }
  0x2a   : > { %s195_s25 = sand.u32 1, %s1116_s17   ;;  %p38_p10 = scmp.eq.s32.totalorder %s35_s21, 0 }
  0x2b   : > { %s839_s29 = sshll.u32 %s195_s25, 3  ;;  %s909_s30 = sshll.u32 %s1124_s19, 7 }
  0x2c   : > { %s1260_s5 = scalar_select %p38_p10, %s1116_s17, %s40_s15  }
  0x2d   : > { %s1265_s26 = scalar_lea.hbm %s1476_s0, %s909_s30  ;;  %s199_s7 = scalar_lea.vmem [#allocation2], %s839_s29 }
  0x2e   : > { %s208_s8 = sshll.u32 %s199_s7, 4  ;;  %p1267_p7 = pnand %p932_p9, %p49_p8  ;;  %s1271_s8 = int_to_ptr.vmem [resolvable:$true] %s208_s8 }
  0x2f   : > { %s1273_s10 = scalar_lea.sflag [#allocation3], %s195_s25  ;;  %s1044_s11 = scalar_lea.hbm %s1265_s26, 128 }
  0x30   : > { %p1045_p11 = scmp.ne.s32.totalorder %s1265_s26, %s1044_s11  ;;  %p1046_p12 = pneg %p1267_p7 }
  0x31   : > { %s1049_s14 = scalar_lea.hbm %s1476_s0, 256  ;;  %p1050_p2 = scmp.lt.u32.totalorder %s1265_s26, %s1476_s0 }
  0x32   : > { %p1047_p13 = pnand %p1046_p12, %p1045_p11  ;;  %p1051_p3 = scmp.lt.u32.totalorder %s1049_s14, %s1044_s11 }
  0x33   : > { %p1053_p1 = scmp.lt.u32.totalorder %s1044_s11, %s1265_s26 }
  0x34   : > { %p1048_p0 = pneg %p1047_p13  ;;  %p1052_p6 = por %p1051_p3, %p1050_p2 }
  0x36   : > { %p1054_p4 = por %p1053_p1, %p1052_p6 }
  0x38   : > { %p1055_p5 = pnand %p1054_p4, %p1048_p0 }
  0x3a   : > { %1058 = shalt.err (!%p1055_p5)
}
  0x3b   : > { %s1059_s25 = scalar_lea.vmem %s1271_s8, 128  ;;  %s1133_s29 = smov [#allocation2]  }
  0x3c   : > { %p1060_p8 = scmp.ne.s32.totalorder %s1271_s8, %s1059_s25  ;;  %s1064_s30 = sshll.u32 %s1133_s29, 4  ;;  %s1065_s30 = int_to_ptr.vmem [resolvable:$false] %s1064_s30 }
  0x3d   : > { %s1066_s27 = scalar_lea.vmem %s1065_s30, 256  ;;  %p1067_p11 = scmp.lt.s32.totalorder %s1271_s8, %s1065_s30 }
  0x3e   : > { %p1062_p9 = pnand %p1060_p8, %p1046_p12  ;;  %p1068_p13 = scmp.lt.s32.totalorder %s1066_s27, %s1059_s25 }
  0x40   : > { %p1063_p10 = pneg %p1062_p9  ;;  %p1069_p2 = por %p1068_p13, %p1067_p11 }
  0x42   : > { %p1070_p3 = pnand %p1069_p2, %p1063_p10 }
  0x44   : > { %1073 = shalt.err (!%p1070_p3)
}
  0x45   : > { %s1134_s6 = smov 64   ;;  %s1135_s7 = smov 4  }
  0x46   : > { %930 = dma.hbm_to_vmem [thread:$0]  (!%p1267_p7), %s1265_s26, 128, %s1271_s8, %s1273_s10, %s1134_s6, %s1134_s6, %s1135_s7  }
  0x47   : > { %p1490_p12 = scmp.ne.s32.totalorder %s1487_s24, 0 }
  0x48   : > { %s222_s11 = sand.u32 (!%p1490_p12), 1, %s1112_s16   ;;  %p1491_p0 = scmp.ne.s32.totalorder (!%p1490_p12), %s1486_s23, 0 }
  0x49   : > { %220 = sbr.rel (%p1490_p12) target bundleno = 515 (0x203), region = 28  ;;  %s843_s12 = sshll.u32 (!%p1490_p12), %s222_s11, 3 }
  0x4a   : > { %s223_s13 = scalar_lea.sflag (!%p1490_p12), [#allocation3], %s222_s11  ;;  %s226_s14 = scalar_lea.vmem (!%p1490_p12), [#allocation2], %s843_s12 }
  0x50   : > { %1099 = dma.done.wait (%p1491_p0), %s223_s13, 128  }
  0x51   : > { %1101 = vsyncadd (%p1491_p0), %s223_s13, 4294967168  ;;  %p1492_p6 = scmp.ne.s32.totalorder %s1485_s22, 0 }
  0x53   : > { %1103 = dma.done.wait (%p1492_p6), [#allocation5], 1024  }
  0x54   : > { %1105 = vsyncadd (%p1492_p6), [#allocation5], 4294966272  ;;  %v1136_v0 = vmov 0   ;;  %v1003_v1 = vld [vmem:[#allocation4 + $0x4] ss:$8 sps:$4 sm:$0xff]   ;;  %v1015_v9 = vld [vmem:[%s226_s14] sm:$0xff]  }
  0x55   : > { %400 = vmatprep.mubr.bf16.mxu0 %v1136_v0  ;;  %v1005_v2 = vld [vmem:[#allocation4] ss:$8 sps:$4 sm:$0xff]   ;;  %368 = vmatprep.subr.bf16.mxu0 %v1003_v1  ;;  %v1006_v3 = vld [vmem:[#allocation4 + $0x14] ss:$8 sps:$4 sm:$0xff]   ;;  %v1008_v4 = vld [vmem:[#allocation4 + $0x10] ss:$8 sps:$4 sm:$0xff]  }
  0x56   : > { %369 = vmatpush1.bf16.msra.mxu0 %v1005_v2  ;;  %v1009_v5 = vld [vmem:[#allocation4 + $0x24] ss:$8 sps:$4 sm:$0xff]   ;;  %v1011_v6 = vld [vmem:[#allocation4 + $0x20] ss:$8 sps:$4 sm:$0xff]   ;;  %v1012_v7 = vld [vmem:[#allocation4 + $0x34] ss:$8 sps:$4 sm:$0xff]  }
  0x57   : > { %370 = vmatprep.subr.bf16.mxu0 %v1006_v3  ;;  %v1014_v8 = vld [vmem:[#allocation4 + $0x30] ss:$8 sps:$4 sm:$0xff]   ;;  %vm364_vm0 = vcmask 523264   ;;  %p279_p7 = scmp.lt.s32.totalorder %s1120_s18, 1  ;;  %vm419_vm1 = vcmask 60416   ;;  %s1138_s15 = smov 64  }
  0x58   : > { %s1139_s21 = smov 56   ;;  %s1140_s25 = smov 112  }
  0x59   : > { %s1501_s18 = smov (!%p279_p7, %s1120_s18), 1  ;;  %s1141_s29 = smov 48  }
  0x5a   : > { %371 = vmatpush1.bf16.msra.mxu0 %v1008_v4  ;;  %s1314_s22 = sshll.u32 %s1501_s18, 6  ;;  %s1137_s18 = smov 120  }
  0x5b   : > { %372 = vmatprep.subr.bf16.mxu0 %v1009_v5  ;;  %s1320_s26 = scalar_lea.vmem %s1478_s2, %s1314_s22  ;;  %s1326_s10 = scalar_lea.vmem %s1480_s4, %s1314_s22 }
  0x5c   : > { %s1142_s30 = smov 104   ;;  %s1143_s27 = smov 40  }
  0x5d   : > { %s1144_s6 = smov 96   ;;  %s1145_s7 = smov 32  }
  0x5e   : > { %373 = vmatpush1.bf16.msra.mxu0 %v1011_v6  ;;  %s1146_s11 = smov 88   ;;  %s1147_s12 = smov 24  }
  0x5f   : > { %374 = vmatprep.subr.bf16.mxu0 %v1012_v7  ;;  %s1148_s13 = smov 80   ;;  %s1149_s14 = smov 16  }
  0x60   : > { %s1150_s23 = smov 72   ;;  %s1151_s24 = smov 8  }
  0x62   : > { %375 = vmatpush1.bf16.msra.mxu0 %v1014_v8 }
  0x65   : > { %860 = vmatmul.mubr.msk.bf16.vlgmr.msra.gmra.mrb[0].mxu0 %vm364_vm0, %v1015_v9 }
 0x138   : > { %v402_v10 = vpop.f32.mrb[0].mxu0 }
 0x139   : > { %v913_v11 = vpack.c.bf16 %v402_v10, %v402_v10  ;;  %v404_v12 = vpop.f32.mrb[1].mxu0 }
 0x13a   : > { %v1328_v13 = vpack.c.bf16 %v404_v12, %v404_v12  ;;  %v406_v14 = vpop.f32.mrb[2].mxu0 }
 0x13b   : > { %v914_v15 = vpack.c.bf16 %v406_v14, %v406_v14  ;;  %440 = vrot.lane.b32.xlu1 %v913_v11, %s1137_s18  ;;  %422 = vrot.lane.b32.xlu0 %v913_v11, %s1138_s15  ;;  %v408_v16 = vpop.f32.mrb[3].mxu0  ;;  %420 = vst.msk [vmem:[%s1320_s26] sm:$0xf] %vm419_vm1, %v913_v11 }
 0x13c   : > { %438 = vst.msk [vmem:[%s1326_s10] sm:$0xf] %vm419_vm1, %v1328_v13  ;;  %v916_v17 = vpack.c.bf16 %v408_v16, %v408_v16 }
 0x13d   : > { %421 = vst.msk [vmem:[%s1320_s26 + $0x4] sm:$0xf] %vm419_vm1, %v914_v15 }
 0x13e   : > { %439 = vst.msk [vmem:[%s1326_s10 + $0x4] sm:$0xf] %vm419_vm1, %v916_v17 }
 0x13f   : > { %449 = vrot.lane.b32.xlu0 %v913_v11, %s1139_s21  ;;  %442 = vrot.lane.b32.xlu1 %v914_v15, %s1137_s18 }
 0x143   : > { %467 = vrot.lane.b32.xlu0 %v913_v11, %s1140_s25  ;;  %451 = vrot.lane.b32.xlu1 %v914_v15, %s1139_s21 }
 0x147   : > { %476 = vrot.lane.b32.xlu0 %v913_v11, %s1141_s29  ;;  %469 = vrot.lane.b32.xlu1 %v914_v15, %s1140_s25 }
 0x14b   : > { %494 = vrot.lane.b32.xlu0 %v913_v11, %s1142_s30  ;;  %478 = vrot.lane.b32.xlu1 %v914_v15, %s1141_s29 }
 0x14f   : > { %503 = vrot.lane.b32.xlu0 %v913_v11, %s1143_s27  ;;  %496 = vrot.lane.b32.xlu1 %v914_v15, %s1142_s30 }
 0x153   : > { %521 = vrot.lane.b32.xlu0 %v913_v11, %s1144_s6  ;;  %505 = vrot.lane.b32.xlu1 %v914_v15, %s1143_s27 }
 0x157   : > { %530 = vrot.lane.b32.xlu0 %v913_v11, %s1145_s7  ;;  %523 = vrot.lane.b32.xlu1 %v914_v15, %s1144_s6 }
 0x15b   : > { %548 = vrot.lane.b32.xlu0 %v913_v11, %s1146_s11  ;;  %532 = vrot.lane.b32.xlu1 %v914_v15, %s1145_s7 }
 0x15f   : > { %557 = vrot.lane.b32.xlu0 %v913_v11, %s1147_s12  ;;  %550 = vrot.lane.b32.xlu1 %v914_v15, %s1146_s11 }
 0x163   : > { %575 = vrot.lane.b32.xlu0 %v913_v11, %s1148_s13  ;;  %559 = vrot.lane.b32.xlu1 %v914_v15, %s1147_s12 }
 0x167   : > { %584 = vrot.lane.b32.xlu0 %v913_v11, %s1149_s14  ;;  %577 = vrot.lane.b32.xlu1 %v914_v15, %s1148_s13 }
 0x16b   : > { %602 = vrot.lane.b32.xlu0 %v913_v11, %s1150_s23  ;;  %586 = vrot.lane.b32.xlu1 %v914_v15, %s1149_s14 }
 0x16f   : > { %611 = vrot.lane.b32.xlu0 %v913_v11, %s1151_s24  ;;  %604 = vrot.lane.b32.xlu1 %v914_v15, %s1150_s23 }
 0x173   : > { %458 = vrot.lane.b32.xlu0 %v1328_v13, %s1137_s18  ;;  %613 = vrot.lane.b32.xlu1 %v914_v15, %s1151_s24 }
 0x177   : > { %485 = vrot.lane.b32.xlu0 %v1328_v13, %s1140_s25  ;;  %460 = vrot.lane.b32.xlu1 %v916_v17, %s1137_s18  ;;  %s1368_s18 = scalar_lea.vmem %s1479_s3, %s1314_s22 }
 0x17b   : > { %512 = vrot.lane.b32.xlu0 %v1328_v13, %s1142_s30  ;;  %487 = vrot.lane.b32.xlu1 %v916_v17, %s1140_s25 }
 0x17f   : > { %539 = vrot.lane.b32.xlu0 %v1328_v13, %s1144_s6  ;;  %514 = vrot.lane.b32.xlu1 %v916_v17, %s1142_s30 }
 0x183   : > { %566 = vrot.lane.b32.xlu0 %v1328_v13, %s1146_s11  ;;  %541 = vrot.lane.b32.xlu1 %v916_v17, %s1144_s6 }
 0x187   : > { %593 = vrot.lane.b32.xlu0 %v1328_v13, %s1148_s13  ;;  %568 = vrot.lane.b32.xlu1 %v916_v17, %s1146_s11 }
 0x18b   : > { %424 = vrot.lane.b32.xlu0 %v914_v15, %s1138_s15  ;;  %595 = vrot.lane.b32.xlu1 %v916_v17, %s1148_s13 }
 0x18f   : > { %620 = vrot.lane.b32.xlu0 %v1328_v13, %s1150_s23  ;;  %622 = vrot.lane.b32.xlu1 %v916_v17, %s1150_s23 }
 0x1ad   : > { %v441_v18 = vpop.permute.xlu1 %440  ;;  %v423_v19 = vpop.permute.xlu0 %422 }
 0x1ae   : > { %865 = vst.msk [vmem:[%s1320_s26 + $0x8] sm:$0xf] %vm419_vm1, %v441_v18  ;;  %428 = vst.msk [vmem:[%s1368_s18] sm:$0xf] %vm419_vm1, %v423_v19 }
 0x1b1   : > { %v450_v20 = vpop.permute.xlu0 %449  ;;  %v443_v21 = vpop.permute.xlu1 %442 }
 0x1b2   : > { %867 = vst.msk [vmem:[%s1368_s18 + $0x8] sm:$0xf] %vm419_vm1, %v450_v20  ;;  %866 = vst.msk [vmem:[%s1320_s26 + $0xc] sm:$0xf] %vm419_vm1, %v443_v21 }
 0x1b5   : > { %v468_v22 = vpop.permute.xlu0 %467  ;;  %v452_v23 = vpop.permute.xlu1 %451 }
 0x1b6   : > { %871 = vst.msk [vmem:[%s1320_s26 + $0x10] sm:$0xf] %vm419_vm1, %v468_v22  ;;  %868 = vst.msk [vmem:[%s1368_s18 + $0xc] sm:$0xf] %vm419_vm1, %v452_v23 }
 0x1b9   : > { %v477_v24 = vpop.permute.xlu0 %476  ;;  %v470_v25 = vpop.permute.xlu1 %469 }
 0x1ba   : > { %873 = vst.msk [vmem:[%s1368_s18 + $0x10] sm:$0xf] %vm419_vm1, %v477_v24  ;;  %872 = vst.msk [vmem:[%s1320_s26 + $0x14] sm:$0xf] %vm419_vm1, %v470_v25 }
 0x1bd   : > { %v495_v26 = vpop.permute.xlu0 %494  ;;  %v479_v27 = vpop.permute.xlu1 %478 }
 0x1be   : > { %877 = vst.msk [vmem:[%s1320_s26 + $0x18] sm:$0xf] %vm419_vm1, %v495_v26  ;;  %874 = vst.msk [vmem:[%s1368_s18 + $0x14] sm:$0xf] %vm419_vm1, %v479_v27 }
 0x1c1   : > { %v504_v28 = vpop.permute.xlu0 %503  ;;  %v497_v29 = vpop.permute.xlu1 %496 }
 0x1c2   : > { %879 = vst.msk [vmem:[%s1368_s18 + $0x18] sm:$0xf] %vm419_vm1, %v504_v28  ;;  %878 = vst.msk [vmem:[%s1320_s26 + $0x1c] sm:$0xf] %vm419_vm1, %v497_v29 }
 0x1c5   : > { %v522_v30 = vpop.permute.xlu0 %521  ;;  %v506_v31 = vpop.permute.xlu1 %505 }
 0x1c6   : > { %883 = vst.msk [vmem:[%s1320_s26 + $0x20] sm:$0xf] %vm419_vm1, %v522_v30  ;;  %880 = vst.msk [vmem:[%s1368_s18 + $0x1c] sm:$0xf] %vm419_vm1, %v506_v31 }
 0x1c9   : > { %v531_v32 = vpop.permute.xlu0 %530  ;;  %v524_v33 = vpop.permute.xlu1 %523 }
 0x1ca   : > { %885 = vst.msk [vmem:[%s1368_s18 + $0x20] sm:$0xf] %vm419_vm1, %v531_v32  ;;  %884 = vst.msk [vmem:[%s1320_s26 + $0x24] sm:$0xf] %vm419_vm1, %v524_v33 }
 0x1cd   : > { %v549_v34 = vpop.permute.xlu0 %548  ;;  %v533_v35 = vpop.permute.xlu1 %532 }
 0x1ce   : > { %889 = vst.msk [vmem:[%s1320_s26 + $0x28] sm:$0xf] %vm419_vm1, %v549_v34  ;;  %886 = vst.msk [vmem:[%s1368_s18 + $0x24] sm:$0xf] %vm419_vm1, %v533_v35 }
 0x1d1   : > { %v558_v36 = vpop.permute.xlu0 %557  ;;  %v551_v37 = vpop.permute.xlu1 %550 }
 0x1d2   : > { %891 = vst.msk [vmem:[%s1368_s18 + $0x28] sm:$0xf] %vm419_vm1, %v558_v36  ;;  %890 = vst.msk [vmem:[%s1320_s26 + $0x2c] sm:$0xf] %vm419_vm1, %v551_v37 }
 0x1d5   : > { %v576_v38 = vpop.permute.xlu0 %575  ;;  %v560_v39 = vpop.permute.xlu1 %559 }
 0x1d6   : > { %895 = vst.msk [vmem:[%s1320_s26 + $0x30] sm:$0xf] %vm419_vm1, %v576_v38  ;;  %892 = vst.msk [vmem:[%s1368_s18 + $0x2c] sm:$0xf] %vm419_vm1, %v560_v39 }
 0x1d9   : > { %v585_v40 = vpop.permute.xlu0 %584  ;;  %v578_v41 = vpop.permute.xlu1 %577 }
 0x1da   : > { %897 = vst.msk [vmem:[%s1368_s18 + $0x30] sm:$0xf] %vm419_vm1, %v585_v40  ;;  %896 = vst.msk [vmem:[%s1320_s26 + $0x34] sm:$0xf] %vm419_vm1, %v578_v41 }
 0x1dd   : > { %v603_v42 = vpop.permute.xlu0 %602  ;;  %v587_v43 = vpop.permute.xlu1 %586 }
 0x1de   : > { %901 = vst.msk [vmem:[%s1320_s26 + $0x38] sm:$0xf] %vm419_vm1, %v603_v42  ;;  %898 = vst.msk [vmem:[%s1368_s18 + $0x34] sm:$0xf] %vm419_vm1, %v587_v43 }
 0x1e1   : > { %v612_v44 = vpop.permute.xlu0 %611  ;;  %v605_v45 = vpop.permute.xlu1 %604 }
 0x1e2   : > { %903 = vst.msk [vmem:[%s1368_s18 + $0x38] sm:$0xf] %vm419_vm1, %v612_v44  ;;  %902 = vst.msk [vmem:[%s1320_s26 + $0x3c] sm:$0xf] %vm419_vm1, %v605_v45 }
 0x1e5   : > { %v459_v46 = vpop.permute.xlu0 %458  ;;  %v614_v47 = vpop.permute.xlu1 %613 }
 0x1e6   : > { %869 = vst.msk [vmem:[%s1326_s10 + $0x8] sm:$0xf] %vm419_vm1, %v459_v46  ;;  %904 = vst.msk [vmem:[%s1368_s18 + $0x3c] sm:$0xf] %vm419_vm1, %v614_v47 }
 0x1e9   : > { %v486_v48 = vpop.permute.xlu0 %485  ;;  %v461_v49 = vpop.permute.xlu1 %460 }
 0x1ea   : > { %875 = vst.msk [vmem:[%s1326_s10 + $0x10] sm:$0xf] %vm419_vm1, %v486_v48  ;;  %870 = vst.msk [vmem:[%s1326_s10 + $0xc] sm:$0xf] %vm419_vm1, %v461_v49 }
 0x1ed   : > { %v513_v50 = vpop.permute.xlu0 %512  ;;  %v488_v51 = vpop.permute.xlu1 %487 }
 0x1ee   : > { %881 = vst.msk [vmem:[%s1326_s10 + $0x18] sm:$0xf] %vm419_vm1, %v513_v50  ;;  %876 = vst.msk [vmem:[%s1326_s10 + $0x14] sm:$0xf] %vm419_vm1, %v488_v51 }
 0x1f1   : > { %v540_v52 = vpop.permute.xlu0 %539  ;;  %v515_v53 = vpop.permute.xlu1 %514 }
 0x1f2   : > { %887 = vst.msk [vmem:[%s1326_s10 + $0x20] sm:$0xf] %vm419_vm1, %v540_v52  ;;  %882 = vst.msk [vmem:[%s1326_s10 + $0x1c] sm:$0xf] %vm419_vm1, %v515_v53 }
 0x1f5   : > { %v567_v54 = vpop.permute.xlu0 %566  ;;  %v542_v55 = vpop.permute.xlu1 %541 }
 0x1f6   : > { %893 = vst.msk [vmem:[%s1326_s10 + $0x28] sm:$0xf] %vm419_vm1, %v567_v54  ;;  %888 = vst.msk [vmem:[%s1326_s10 + $0x24] sm:$0xf] %vm419_vm1, %v542_v55 }
 0x1f9   : > { %v594_v56 = vpop.permute.xlu0 %593  ;;  %v569_v57 = vpop.permute.xlu1 %568 }
 0x1fa   : > { %899 = vst.msk [vmem:[%s1326_s10 + $0x30] sm:$0xf] %vm419_vm1, %v594_v56  ;;  %894 = vst.msk [vmem:[%s1326_s10 + $0x2c] sm:$0xf] %vm419_vm1, %v569_v57 }
 0x1fd   : > { %v425_v58 = vpop.permute.xlu0 %424  ;;  %v596_v59 = vpop.permute.xlu1 %595 }
 0x1fe   : > { %429 = vst.msk [vmem:[%s1368_s18 + $0x4] sm:$0xf] %vm419_vm1, %v425_v58  ;;  %900 = vst.msk [vmem:[%s1326_s10 + $0x34] sm:$0xf] %vm419_vm1, %v596_v59 }
 0x201   : > { %v621_v60 = vpop.permute.xlu0 %620  ;;  %v623_v61 = vpop.permute.xlu1 %622 }
 0x202   : > { %905 = vst.msk [vmem:[%s1326_s10 + $0x38] sm:$0xf] %vm419_vm1, %v621_v60  ;;  %906 = vst.msk [vmem:[%s1326_s10 + $0x3c] sm:$0xf] %vm419_vm1, %v623_v61 }
 0x203 PF: > { %s19_s20 = sadd.s32 1, %s1128_s20   ;;  %s1493_s15 = smov %s1112_s16 }
 0x204   : > { %p16_p1 = scmp.ge.s32.totalorder %s19_s20, 4   ;;  %s1494_s16 = smov %s1116_s17 }
 0x205   : > { %s1495_s17 = smov %s1260_s5  ;;  %s1496_s18 = smov %s1124_s19 }
 0x206   : > { %s1497_s19 = smov %s1499_s28  ;;  %18 = sbr.rel (!%p16_p1) target bundleno = 5 (0x5), region = 117 }
 0x20d   :  { %709 = vsyncpa [#allocation3], 1 }
 0x20e   :  { %711 = vsyncpa [#allocation3 + $0x1], 1 }
 0x20f   :  { %712 = vsyncpa [#allocation5], 1 }

</bundles_post_ra>
